<compile_context>
chip_gen: v7x
topology: tpu7x:2x2x1
jax: 0.10.0
libtpu: 0.0.40
codegen_flags: <defaults>
</compile_context>

<pallas_src>
import functools

import jax
import jax.numpy as jnp
import numpy as np
from jax.experimental import pallas as pl
from jax.experimental.pallas import tpu as pltpu

IGNORE_INDEX = -100


def _default_num_cores():
    """2 TensorCores per chip only on v7x; v5e/v6e are single-core."""
    try:
        kind = jax.devices()[0].device_kind.lower()
    except Exception:
        return 1
    if "v7" in kind or "tpu7" in kind or "tpu v7" in kind:
        return 2
    return 1


def _focal_kernel(x_ref, y_ref, alpha_ref, sum_ref, *, gamma, ignore_index,
                  num_blocks, blocks_per_core, has_alpha):
    cc = pl.program_id(0)   # core slice (parallel axis)
    i = pl.program_id(1)    # tile index within this core's slice (arbitrary axis)

    @pl.when(i == 0)
    def _init():
        sum_ref[...] = jnp.zeros_like(sum_ref)

    # Overflow blocks created by the per-core split are clamped (index_map) to
    # re-read the last real block; skip their compute so nothing double-counts.
    @pl.when(cc * blocks_per_core + i < num_blocks)
    def _compute():
        x = x_ref[...].astype(jnp.float32)            # (C, T): classes on sublanes
        y = y_ref[...]                                # (1, T) int32 labels
        c, t = x.shape

        # Padded tail columns carry ignore_index, so this single compare is the
        # only validity mask needed (no lane iota / in-bounds check).
        valid = y != ignore_index                     # (1, T)

        # log-softmax over the class (sublane) axis.
        m = jnp.max(x, axis=0, keepdims=True)         # (1, T)
        z = x - m                                     # (C, T)
        ez = jnp.exp(z)                               # (C, T) single dense EUP pass
        sumexp = jnp.sum(ez, axis=0, keepdims=True)   # (1, T)
        lse = jnp.log(sumexp)                         # (1, T)

        # Gather at the label class via one-hot along the class axis.
        cls = jax.lax.broadcasted_iota(jnp.int32, (c, t), 0)
        onehot = (cls == y).astype(jnp.float32)       # (C, T); all-zero if ignored

        z_y = jnp.sum(z * onehot, axis=0, keepdims=True)       # (1, T)
        log_pt = z_y - lse                                      # (1, T)

        # pt without a second exp: reuse exp(z); approx reciprocal refined with
        # two Newton steps (VPU-only, row-shaped) to keep ~f32 accuracy.
        ez_y = jnp.sum(ez * onehot, axis=0, keepdims=True)      # exp(z_y)
        r = pl.reciprocal(sumexp, approx=True)
        r = r * (2.0 - sumexp * r)
        r = r * (2.0 - sumexp * r)
        pt = ez_y * r

        if has_alpha:
            # In-kernel alpha[y] gather: alpha is a resident (C, 1) block.
            a_t = jnp.sum(alpha_ref[...] * onehot, axis=0, keepdims=True)
            ce = -a_t * log_pt                # NLLLoss(weight=alpha, red='none')
        else:
            ce = -log_pt

        d = jnp.maximum(1.0 - pt, 0.0)        # clamp ulp overshoot -> no NaN pow
        if gamma == 0.0:
            loss = ce
        elif float(gamma).is_integer() and 0.0 < gamma <= 4.0:
            focal = d
            for _ in range(int(gamma) - 1):
                focal = focal * d             # VPU instead of EUP log/exp pow
            loss = focal * ce
        else:
            loss = (d ** jnp.float32(gamma)) * ce

        # Lane-wise accumulation into the per-core resident output block.
        sum_ref[...] += jnp.where(valid, loss, 0.0)[None]        # (1, 1, T)


def focal_loss_cn(xt, y, alpha=None, *, gamma=0.0, reduction="mean",
                  ignore_index=IGNORE_INDEX, tile_cols=65536, num_cores=None):
    """Focal loss on logits already laid out as (C, N) = (classes, samples).

    Producers that can emit this layout directly (e.g. by computing the final
    classifier as W @ h.T) avoid the XLA transpose entirely, which is the main
    extra HBM cost on bandwidth-bound v5e/v6e.
    """
    if reduction not in ("mean", "sum"):
        raise ValueError("only 'mean' and 'sum' reductions are supported")

    c, n = xt.shape
    y = y.astype(jnp.int32).reshape(1, n)

    if num_cores is None:
        num_cores = _default_num_cores()
    num_cores = max(1, int(num_cores))

    # Lane tile: large (amortizes per-step overhead), multiple of 128, capped by
    # a VMEM budget for the double-buffered logits stream and by (padded) N.
    tile = max(128, (int(tile_cols) // 128) * 128)
    c_pad = ((c + 7) // 8) * 8
    vmem_budget = 12 * 1024 * 1024                       # logits double-buffer budget
    tile_cap = max(128, (vmem_budget // (c_pad * 4 * 2) // 128) * 128)
    tile = min(tile, tile_cap, ((n + 127) // 128) * 128)

    num_blocks = pl.cdiv(n, tile)
    bpc = pl.cdiv(num_blocks, num_cores)                 # blocks per core
    n_pad = num_blocks * tile

    # Pad labels (tiny) with ignore_index so the partial tail block and any
    # clamped / overflow blocks are masked purely via `y != ignore_index`.
    y_pad = jnp.pad(y, ((0, 0), (0, n_pad - n)), constant_values=ignore_index)

    has_alpha = alpha is not None
    if has_alpha:
        alpha_col = jnp.asarray(alpha, jnp.float32).reshape(c, 1)
    else:
        alpha_col = jnp.ones((c, 1), jnp.float32)        # unread by the kernel

    def data_idx(cc, i):
        # Clamp so overflow slots re-read the last real block (their compute is
        # skipped in-kernel via the logical block index).
        return (0, jnp.minimum(cc * bpc + i, num_blocks - 1))

    kernel = functools.partial(
        _focal_kernel, gamma=float(gamma), ignore_index=int(ignore_index),
        num_blocks=int(num_blocks), blocks_per_core=int(bpc),
        has_alpha=has_alpha)

    s = pl.pallas_call(
        kernel,
        out_shape=jax.ShapeDtypeStruct((num_cores, 1, tile), jnp.float32),
        grid_spec=pltpu.PrefetchScalarGridSpec(
            num_scalar_prefetch=0,
            grid=(num_cores, bpc),
            in_specs=[
                pl.BlockSpec((c, tile), data_idx),           # logits (C on sublanes)
                pl.BlockSpec((1, tile), data_idx),           # labels
                pl.BlockSpec((c, 1), lambda cc, i: (0, 0)),  # per-class alpha, resident
            ],
            out_specs=pl.BlockSpec((1, 1, tile), lambda cc, i: (cc, 0, 0)),
        ),
        compiler_params=pltpu.CompilerParams(
            dimension_semantics=("parallel", "arbitrary"),
            vmem_limit_bytes=32 * 1024 * 1024),
    )(xt, y_pad, alpha_col)

    total = jnp.sum(s)
    if reduction == "sum":
        return total
    # Unignored-sample count: trivial XLA reduce over the (N,) labels.
    count = jnp.sum((y != ignore_index).astype(jnp.float32))
    # mean over unignored samples; returns 0.0 if every row is ignored (matches
    # the PyTorch module's early-return of torch.tensor(0.0)).
    return jnp.where(count > 0,
                     total / jnp.maximum(count, jnp.float32(1.0)),
                     jnp.float32(0.0))


def focal_loss(x, y, alpha=None, *, gamma=0.0, reduction="mean",
               ignore_index=IGNORE_INDEX, tile_cols=65536, num_cores=None):
    """Module-faithful entry point: x is (N, C) or (B, C, d1..dK)."""
    # TODO(synk): reduction='none' returns a data-dependent-length vector (only
    # the unignored rows) in PyTorch; not representable with fixed-shape outputs.
    if reduction not in ("mean", "sum"):
        raise ValueError("only 'mean' and 'sum' reductions are supported")

    c = x.shape[1]
    if x.ndim > 2:
        # PyTorch: x.permute(0, 2..K, 1).reshape(-1, C); we build (C, N) with the
        # same column (= row) ordering.
        perm = (1, 0) + tuple(range(2, x.ndim))
        xt = jnp.transpose(x, perm).reshape(c, -1)
        y_flat = y.reshape(-1)
    else:
        # Producers that can emit (C, N) directly should call focal_loss_cn and
        # skip this XLA transpose (it re-reads + re-writes the full logits).
        xt = x.T
        y_flat = y.reshape(-1)
    return focal_loss_cn(xt, y_flat, alpha, gamma=gamma, reduction=reduction,
                         ignore_index=ignore_index, tile_cols=tile_cols,
                         num_cores=num_cores)


def _reference_focal_loss(x, y, alpha, gamma, ignore_index, reduction="mean"):
    """Pure-JAX reference mirroring the PyTorch forward."""
    if x.ndim > 2:
        c = x.shape[1]
        perm = (0,) + tuple(range(2, x.ndim)) + (1,)
        x = jnp.transpose(x, perm).reshape(-1, c)
        y = y.reshape(-1)
    c = x.shape[-1]
    mask = y != ignore_index
    ys = jnp.where(mask, y, 0)
    log_p = jax.nn.log_softmax(x.astype(jnp.float32), axis=-1)
    log_pt = jnp.take_along_axis(log_p, ys[:, None], axis=-1)[:, 0]
    a = jnp.ones((c,), jnp.float32) if alpha is None else jnp.asarray(alpha, jnp.float32)
    ce = -a[ys] * log_pt
    pt = jnp.exp(log_pt)
    loss = ((1.0 - pt) ** gamma) * ce
    loss = jnp.where(mask, loss, 0.0)
    cnt = jnp.sum(mask.astype(jnp.float32))
    if reduction == "sum":
        return jnp.sum(loss)
    return jnp.where(cnt > 0, jnp.sum(loss) / jnp.maximum(cnt, 1.0), 0.0)


if __name__ == "__main__":
    key = jax.random.PRNGKey(0)
    k1, k2, k3, k4, k5, k6, k7, k8 = jax.random.split(key, 8)

    # Test 1: NCHW-style 4-D input, per-class alpha, integer gamma (fast path),
    # N = 240 -> exercises the partial (masked) tail block.
    B, C, H, W = 2, 6, 12, 10
    gamma = 2.0
    x = jax.random.normal(k1, (B, C, H, W), dtype=jnp.float32)
    y = jax.random.randint(k2, (B, H, W), 0, C, dtype=jnp.int32)
    drop = jax.random.bernoulli(k3, p=0.2, shape=(B, H, W))
    y = jnp.where(drop, jnp.int32(IGNORE_INDEX), y)
    alpha = jnp.linspace(0.5, 1.5, C, dtype=jnp.float32)

    out_mean = jax.block_until_ready(
        focal_loss(x, y, alpha, gamma=gamma, reduction="mean"))
    out_sum = jax.block_until_ready(
        focal_loss(x, y, alpha, gamma=gamma, reduction="sum"))
    ref_mean = _reference_focal_loss(x, y, alpha, gamma, IGNORE_INDEX, "mean")
    ref_sum = _reference_focal_loss(x, y, alpha, gamma, IGNORE_INDEX, "sum")
    np.testing.assert_allclose(np.asarray(out_mean), np.asarray(ref_mean),
                               rtol=1e-5, atol=1e-6)
    np.testing.assert_allclose(np.asarray(out_sum), np.asarray(ref_sum),
                               rtol=1e-5, atol=1e-5)

    # Test 2: plain 2-D (N, C) input, alpha=None, non-integer gamma (pow path).
    N2, C2 = 300, 7
    x2 = jax.random.normal(k4, (N2, C2), dtype=jnp.float32)
    y2 = jax.random.randint(k5, (N2,), 0, C2, dtype=jnp.int32)
    y2 = y2.at[::11].set(IGNORE_INDEX)
    out2 = jax.block_until_ready(
        focal_loss(x2, y2, None, gamma=1.5, reduction="mean"))
    ref2 = _reference_focal_loss(x2, y2, None, 1.5, IGNORE_INDEX, "mean")
    np.testing.assert_allclose(np.asarray(out2), np.asarray(ref2),
                               rtol=1e-5, atol=1e-6)

    # Test 3: forced 2-core split + small tiles -> multiple grid steps per core,
    # a partial tail block, one overflow (clamped + skipped) block, and C=9
    # (class count crossing the 8-sublane boundary).
    N3, C3 = 700, 9
    x3 = jax.random.normal(k6, (N3, C3), dtype=jnp.float32)
    y3 = jax.random.randint(k7, (N3,), 0, C3, dtype=jnp.int32)
    y3 = y3.at[::7].set(IGNORE_INDEX)
    alpha3 = jnp.linspace(0.25, 2.0, C3, dtype=jnp.float32)
    out3 = jax.block_until_ready(
        focal_loss(x3, y3, alpha3, gamma=2.0, reduction="mean",
                   tile_cols=256, num_cores=2))
    ref3 = _reference_focal_loss(x3, y3, alpha3, 2.0, IGNORE_INDEX, "mean")
    np.testing.assert_allclose(np.asarray(out3), np.asarray(ref3),
                               rtol=1e-5, atol=1e-6)

    # Test 4: every label ignored -> loss is exactly 0.0 (module's early return).
    x4 = jax.random.normal(k8, (64, 6), dtype=jnp.float32)
    y4 = jnp.full((64,), IGNORE_INDEX, dtype=jnp.int32)
    out4 = jax.block_until_ready(
        focal_loss(x4, y4, alpha, gamma=2.0, reduction="mean"))
    np.testing.assert_allclose(np.asarray(out4), 0.0, atol=1e-7)

    print("KERNEL_OK")
</pallas_src>

<mosaic_0001>
module attributes {stable_mosaic.version = 11 : i64} {
  func.func @_focal_kernel(%arg0: i32, %arg1: i32, %arg2: memref<6x256xf32, #tpu.memory_space<vmem>>, %arg3: memref<1x256xi32, #tpu.memory_space<vmem>>, %arg4: memref<6x1xf32, #tpu.memory_space<vmem>>, %arg5: memref<1x1x256xf32, #tpu.memory_space<vmem>>) attributes {dimension_semantics = [#tpu.dimension_semantics<parallel>, #tpu.dimension_semantics<arbitrary>], iteration_bounds = array<i64: 1, 1>, scalar_prefetch = 0 : i64, scratch_operands = 0 : i64, tpu.core_type = #tpu.core_type<tc>, window_params = [{transform_indices = @transform_0, window_bounds = array<i64: 6, 256>}, {transform_indices = @transform_1, window_bounds = array<i64: 1, 256>}, {pipeline_mode = #tpu.pipeline_mode<synchronous>, transform_indices = @transform_2, window_bounds = array<i64: 6, 1>}, {transform_indices = @transform_3, window_bounds = array<i64: 1, 1, 256>}]} {
    %c0_i32 = arith.constant 0 : i32
    %0 = arith.cmpi eq, %arg1, %c0_i32 : i32
    %1 = arith.extui %0 : i1 to i32
    %c0_i32_0 = arith.constant 0 : i32
    %2 = arith.cmpi ne, %1, %c0_i32_0 : i32
    scf.if %2 {
      %cst = arith.constant 0.000000e+00 : f32
      %8 = vector.broadcast %cst : f32 to vector<1x1x256xf32>
      %c0 = arith.constant 0 : index
      %c0_3 = arith.constant 0 : index
      %c0_4 = arith.constant 0 : index
      %9 = vector.load %arg5[%c0, %c0_3, %c0_4] : memref<1x1x256xf32, #tpu.memory_space<vmem>>, vector<1x1x256xf32>
      tpu.vector_store %arg5[%c0, %c0_3, %c0_4], %8 {strides = array<i32>} : memref<1x1x256xf32, #tpu.memory_space<vmem>>, vector<1x1x256xf32>,
    } else {
    }
    %c1_i32 = arith.constant 1 : i32
    %3 = arith.muli %arg0, %c1_i32 : i32
    %4 = arith.addi %3, %arg1 : i32
    %c1_i32_1 = arith.constant 1 : i32
    %5 = arith.cmpi slt, %4, %c1_i32_1 : i32
    %6 = arith.extui %5 : i1 to i32
    %c0_i32_2 = arith.constant 0 : i32
    %7 = arith.cmpi ne, %6, %c0_i32_2 : i32
    scf.if %7 {
      %c0 = arith.constant 0 : index
      %c0_3 = arith.constant 0 : index
      %8 = vector.load %arg2[%c0, %c0_3] : memref<6x256xf32, #tpu.memory_space<vmem>>, vector<6x256xf32>
      %c0_4 = arith.constant 0 : index
      %c0_5 = arith.constant 0 : index
      %9 = vector.load %arg3[%c0_4, %c0_5] : memref<1x256xi32, #tpu.memory_space<vmem>>, vector<1x256xi32>
      %c-100_i32 = arith.constant -100 : i32
      %10 = vector.broadcast %c-100_i32 : i32 to vector<1x256xi32>
      %11 = arith.cmpi ne, %9, %10 : vector<1x256xi32>
      %cst = arith.constant dense<0xFF800000> : vector<256xf32>
      %12 = vector.multi_reduction <maximumf>, %8, %cst [0] : vector<6x256xf32> to vector<256xf32>
      %13 = vector.shape_cast %12 : vector<256xf32> to vector<1x256xf32>
      %14 = vector.broadcast %13 : vector<1x256xf32> to vector<6x256xf32>
      %15 = arith.subf %8, %14 : vector<6x256xf32>
      %16 = math.exp %15 : vector<6x256xf32>
      %cst_6 = arith.constant dense<0.000000e+00> : vector<256xf32>
      %17 = vector.multi_reduction <add>, %16, %cst_6 [0] : vector<6x256xf32> to vector<256xf32>
      %18 = vector.shape_cast %17 : vector<256xf32> to vector<1x256xf32>
      %19 = math.log %18 : vector<1x256xf32>
      %20 = tpu.iota {dimensions = array<i32: 0>} : vector<6x256xi32>
      %21 = vector.broadcast %9 : vector<1x256xi32> to vector<6x256xi32>
      %22 = arith.cmpi eq, %20, %21 : vector<6x256xi32>
      %23 = arith.extui %22 : vector<6x256xi1> to vector<6x256xi32>
      %24 = arith.sitofp %23 : vector<6x256xi32> to vector<6x256xf32>
      %25 = arith.mulf %15, %24 : vector<6x256xf32>
      %cst_7 = arith.constant dense<0.000000e+00> : vector<256xf32>
      %26 = vector.multi_reduction <add>, %25, %cst_7 [0] : vector<6x256xf32> to vector<256xf32>
      %27 = vector.shape_cast %26 : vector<256xf32> to vector<1x256xf32>
      %28 = arith.subf %27, %19 : vector<1x256xf32>
      %29 = arith.mulf %16, %24 : vector<6x256xf32>
      %cst_8 = arith.constant dense<0.000000e+00> : vector<256xf32>
      %30 = vector.multi_reduction <add>, %29, %cst_8 [0] : vector<6x256xf32> to vector<256xf32>
      %31 = vector.shape_cast %30 : vector<256xf32> to vector<1x256xf32>
      %32 = tpu.reciprocal %18 {approx = true} : vector<1x256xf32> -> vector<1x256xf32>
      %33 = arith.mulf %18, %32 : vector<1x256xf32>
      %cst_9 = arith.constant 2.000000e+00 : f32
      %34 = vector.broadcast %cst_9 : f32 to vector<1x256xf32>
      %35 = arith.subf %34, %33 : vector<1x256xf32>
      %36 = arith.mulf %32, %35 : vector<1x256xf32>
      %37 = arith.mulf %18, %36 : vector<1x256xf32>
      %cst_10 = arith.constant 2.000000e+00 : f32
      %38 = vector.broadcast %cst_10 : f32 to vector<1x256xf32>
      %39 = arith.subf %38, %37 : vector<1x256xf32>
      %40 = arith.mulf %36, %39 : vector<1x256xf32>
      %41 = arith.mulf %31, %40 : vector<1x256xf32>
      %c0_11 = arith.constant 0 : index
      %c0_12 = arith.constant 0 : index
      %42 = vector.load %arg4[%c0_11, %c0_12] : memref<6x1xf32, #tpu.memory_space<vmem>>, vector<6x1xf32>
      %43 = vector.broadcast %42 : vector<6x1xf32> to vector<6x256xf32>
      %44 = arith.mulf %43, %24 : vector<6x256xf32>
      %cst_13 = arith.constant dense<0.000000e+00> : vector<256xf32>
      %45 = vector.multi_reduction <add>, %44, %cst_13 [0] : vector<6x256xf32> to vector<256xf32>
      %46 = vector.shape_cast %45 : vector<256xf32> to vector<1x256xf32>
      %cst_14 = arith.constant 0.000000e+00 : f32
      %47 = vector.broadcast %cst_14 : f32 to vector<1x256xf32>
      %48 = arith.subf %47, %46 : vector<1x256xf32>
      %49 = arith.mulf %48, %28 : vector<1x256xf32>
      %cst_15 = arith.constant 1.000000e+00 : f32
      %50 = vector.broadcast %cst_15 : f32 to vector<1x256xf32>
      %51 = arith.subf %50, %41 : vector<1x256xf32>
      %cst_16 = arith.constant 0.000000e+00 : f32
      %52 = vector.broadcast %cst_16 : f32 to vector<1x256xf32>
      %53 = arith.maximumf %51, %52 : vector<1x256xf32>
      %54 = arith.mulf %53, %53 : vector<1x256xf32>
      %55 = arith.mulf %54, %49 : vector<1x256xf32>
      %c0_17 = arith.constant 0 : index
      %c0_18 = arith.constant 0 : index
      %c0_19 = arith.constant 0 : index
      %56 = vector.load %arg5[%c0_17, %c0_18, %c0_19] : memref<1x1x256xf32, #tpu.memory_space<vmem>>, vector<1x1x256xf32>
      %cst_20 = arith.constant 0.000000e+00 : f32
      %57 = vector.broadcast %cst_20 : f32 to vector<1x256xf32>
      %58 = arith.select %11, %55, %57 : vector<1x256xi1>, vector<1x256xf32>
      %59 = vector.shape_cast %58 : vector<1x256xf32> to vector<1x1x256xf32>
      %60 = arith.addf %56, %59 : vector<1x1x256xf32>
      %c0_21 = arith.constant 0 : index
      %c0_22 = arith.constant 0 : index
      %c0_23 = arith.constant 0 : index
      %61 = vector.load %arg5[%c0_21, %c0_22, %c0_23] : memref<1x1x256xf32, #tpu.memory_space<vmem>>, vector<1x1x256xf32>
      tpu.vector_store %arg5[%c0_21, %c0_22, %c0_23], %60 {strides = array<i32>} : memref<1x1x256xf32, #tpu.memory_space<vmem>>, vector<1x1x256xf32>,
    } else {
    }
    return
  }
  func.func @transform_0(%arg0: i32, %arg1: i32) -> (i32, i32) {
    %c1_i32 = arith.constant 1 : i32
    %0 = arith.muli %arg0, %c1_i32 : i32
    %1 = arith.addi %0, %arg1 : i32
    %c0_i32 = arith.constant 0 : i32
    %2 = arith.minsi %1, %c0_i32 : i32
    %c0_i32_0 = arith.constant 0 : i32
    %c0_i32_1 = arith.constant 0 : i32
    return %c0_i32_0, %2 : i32, i32
  }
  func.func @transform_1(%arg0: i32, %arg1: i32) -> (i32, i32) {
    %c1_i32 = arith.constant 1 : i32
    %0 = arith.muli %arg0, %c1_i32 : i32
    %1 = arith.addi %0, %arg1 : i32
    %c0_i32 = arith.constant 0 : i32
    %2 = arith.minsi %1, %c0_i32 : i32
    %c0_i32_0 = arith.constant 0 : i32
    %c0_i32_1 = arith.constant 0 : i32
    return %c0_i32_0, %2 : i32, i32
  }
  func.func @transform_2(%arg0: i32, %arg1: i32) -> (i32, i32) {
    %c0_i32 = arith.constant 0 : i32
    %c0_i32_0 = arith.constant 0 : i32
    %c0_i32_1 = arith.constant 0 : i32
    return %c0_i32, %c0_i32_0 : i32, i32
  }
  func.func @transform_3(%arg0: i32, %arg1: i32) -> (i32, i32, i32) {
    %c0_i32 = arith.constant 0 : i32
    %c0_i32_0 = arith.constant 0 : i32
    %c0_i32_1 = arith.constant 0 : i32
    return %arg0, %c0_i32, %c0_i32_0 : i32, i32, i32
  }
}

</mosaic_0001>

<bundles_post_ra>
// kernel: tpu_custom_call.1
= control target key start
LH: loop header
LB: loop body
LE: loop exit
PB: predicated region body
PF: predicated region fallthrough
CT: control target
= control target key end

     0   :  { %8 = vsyncpa [#allocation3], 0  ;;  %s432_s0 = inlined_call_operand.hbm [shape: f32[6,240], index: 0, kind: input, shape index: {}]   ;;  %s433_s1 = inlined_call_operand.vmem [shape: s32[1,256], index: 1, kind: input, shape index: {}]   ;;  %s434_s2 = inlined_call_operand.vmem [shape: f32[6,1], index: 2, kind: input, shape index: {}]   ;;  %s435_s3 = inlined_call_operand.hbm [shape: f32[1,1,256], index: 3, kind: output, shape index: {}]  }
   0x1   :  { %9 = vsyncpa [#allocation4], 0  ;;  %s337_s12 = smov [#allocation2]   ;;  %s289_s16 = scalar_lea.hbm %s432_s0, 256 }
   0x2   :  { %s22_s13 = sshll.u32 %s337_s12, 4  ;;  %p290_p0 = scmp.ne.s32.totalorder %s432_s0, %s289_s16  ;;  %s23_s13 = int_to_ptr.vmem [resolvable:$true] %s22_s13 }
   0x3   :  { %p293_p1 = scmp.lt.u32.totalorder %s289_s16, %s432_s0 }
   0x5   :  { %p295_p2 = pnand %p293_p1, %p290_p0 }
   0x7   :  { %298 = shalt.err (!%p295_p2)
}
   0x8   :  { %s299_s21 = scalar_lea.vmem %s23_s13, 256  ;;  %p304_p4 = scmp.lt.s32.totalorder %s23_s13, %s23_s13 }
   0x9   :  { %p300_p3 = scmp.ne.s32.totalorder %s23_s13, %s299_s21  ;;  %p305_p5 = scmp.lt.s32.totalorder %s299_s21, %s299_s21 }
   0xb   :  { %p306_p6 = por %p305_p5, %p304_p4 }
   0xd   :  { %p307_p7 = pnand %p306_p6, %p300_p3 }
   0xf   :  { %310 = shalt.err (!%p307_p7)
}
  0x10   :  { %25 = dma.hbm_to_vmem [thread:$0]  %s432_s0, 256, %s23_s13, [#allocation3]  }
  0x11   :  { %333 = dma.done.wait [#allocation3], 256  }
  0x12   :  { %334 = vsyncadd [#allocation3], 4294967040  ;;  %v70_v0 = vlaneseq  ;;  %v338_v1 = vmov 0   ;;  %v339_v4 = vmov 0.0   ;;  %v189_v7 = vld [vmem:[%s434_s2] sm:$0x3f] }
  0x13   :  { %276 = vset.pattern.permute.xlu0 %v338_v1  ;;  %v390_v8 = vld [vmem:[%s433_s1] sm:$0x3]  ;;  %vm84_vm3 = vcmask 1045504   ;;  %v81_v14 = vld [vmem:[#allocation2 + $0x8] sm:$0x3f]  ;;  %s341_s1 = smov [#allocation5]  }
  0x14   :  { %vm374_vm0 = vcmp.lt.s32.totalorder %v70_v0, 256  ;;  %v378_v3 = vshrl.u32 %v70_v0, 7  ;;  %192 = vperm.xlu0 %276, %v189_v7   ;;  %v80_v13 = vld [vmem:[#allocation2] sm:$0x3f]  ;;  %v92_v16 = vsel %vm84_vm3, %v81_v14, -inf  ;;  %vm83_vm4 = vcmp.ne.s32.totalorder %v390_v8, 4294967196 }
  0x15   :  { %74 = vst.msk [vmem:[#allocation5] sm:$0x3] %vm374_vm0, %v339_v4  ;;  %v85_v15 = vsel %vm84_vm3, %v80_v13, -inf  ;;  %v93_v18 = vrot.slane %v92_v16, 4  ;;  %s255_s2 = sshll.u32 %s341_s1, 4  ;;  %s256_s2 = int_to_ptr.vmem [resolvable:$true] %s255_s2 }
  0x16   :  { %v127_v5 = vsub.s32 0, %v378_v3  ;;  %v131_v6 = vsub.s32 1, %v378_v3  ;;  %v86_v17 = vrot.slane %v85_v15, 4  ;;  %s311_s27 = scalar_lea.vmem %s256_s2, 32  ;;  %p316_p9 = scmp.lt.s32.totalorder %s256_s2, %s256_s2 }
  0x17   :  { %v94_v20 = vmax.f32 %v92_v16, %v93_v18  ;;  %p312_p8 = scmp.ne.s32.totalorder %s256_s2, %s311_s27  ;;  %p317_p10 = scmp.lt.s32.totalorder %s311_s27, %s311_s27 }
  0x18   :  { %v128_v9 = vrot.slane %v390_v8, %v127_v5  ;;  %v132_v10 = vrot.slane %v390_v8, %v131_v6  ;;  %v87_v19 = vmax.f32 %v85_v15, %v86_v17 }
  0x19   :  { %v95_v22 = vrot.slane %v94_v20, 2  ;;  %p318_p11 = por %p317_p10, %p316_p9 }
  0x1a   :  { %vm133_vm1 = vcmp.eq.s32.totalorder %v378_v3, %v128_v9  ;;  %vm134_vm2 = vcmp.eq.s32.totalorder %v378_v3, %v132_v10  ;;  %v88_v21 = vrot.slane %v87_v19, 2 }
  0x1b   :  { %v396_v11 = vsel %vm133_vm1, 1.0, %v339_v4  ;;  %v398_v12 = vsel %vm134_vm2, 1.0, %v339_v4  ;;  %v96_v24 = vmax.f32 %v94_v20, %v95_v22  ;;  %p319_p12 = pnand %p318_p11, %p312_p8 }
  0x1c   :  { %v89_v23 = vmax.f32 %v87_v19, %v88_v21 }
  0x1d   :  { %v97_v26 = vrot.slane %v96_v24, 1 }
  0x1e   :  { %v90_v25 = vrot.slane %v89_v23, 1 }
  0x1f   :  { %v98_v28 = vmax.f32 %v96_v24, %v97_v26 }
  0x20   :  { %v91_v27 = vmax.f32 %v89_v23, %v90_v25 }
  0x21   :  { %v100_v30 = vsub.f32 %v81_v14, %v98_v28 }
  0x22   :  { %v99_v29 = vsub.f32 %v80_v13, %v91_v27 }
  0x23   :  { %v103_v32 = vmul.f32 1.442695, %v100_v30  ;;  %v140_v60 = vmul.f32 %v398_v12, %v100_v30 }
  0x24   :  { %v101_v31 = vmul.f32 1.442695, %v99_v29  ;;  %v139_v59 = vmul.f32 %v396_v11, %v99_v29 }
  0x25   :  { %v148_v4 = vsel %vm84_vm3, %v140_v60, 0.0 }
  0x26   :  { %277 = vpow2.f32 %v101_v31  ;;  %v141_v1 = vsel %vm84_vm3, %v139_v59, 0.0  ;;  %v149_v13 = vrot.slane %v148_v4, 4 }
  0x27   :  { %279 = vpow2.f32 %v103_v32  ;;  %v142_v10 = vrot.slane %v141_v1, 4 }
  0x28   :  { %v150_v19 = vadd.f32 %v149_v13, %v148_v4 }
  0x29   :  { %v143_v18 = vadd.f32 %v142_v10, %v141_v1 }
  0x2a   :  { %v151_v25 = vrot.slane %v150_v19, 2 }
  0x2b   :  { %v144_v24 = vrot.slane %v143_v18, 2 }
  0x2c   :  { %v152_v32 = vadd.f32 %v151_v25, %v150_v19 }
  0x2d   :  { %v145_v31 = vadd.f32 %v144_v24, %v143_v18  ;;  %v223_v18 = vld [vmem:[#allocation5] sm:$0x3] }
  0x30   :  { %v278_v33 = vpop.eup %277 }
  0x31   :  { %v280_v34 = vpop.eup %279  ;;  %v105_v35 = vsel %vm84_vm3, %v278_v33, 0.0  ;;  %v157_v49 = vmul.f32 %v278_v33, %v396_v11 }
  0x32   :  { %v112_v36 = vsel %vm84_vm3, %v280_v34, 0.0  ;;  %v106_v37 = vrot.slane %v105_v35, 4  ;;  %v158_v50 = vmul.f32 %v280_v34, %v398_v12 }
  0x33   :  { %v113_v38 = vrot.slane %v112_v36, 4  ;;  %v159_v52 = vsel %vm84_vm3, %v157_v49, 0.0 }
  0x34   :  { %v107_v39 = vadd.f32 %v106_v37, %v105_v35  ;;  %v166_v54 = vsel %vm84_vm3, %v158_v50, 0.0  ;;  %v160_v55 = vrot.slane %v159_v52, 4 }
  0x35   :  { %v114_v40 = vadd.f32 %v113_v38, %v112_v36  ;;  %v167_v56 = vrot.slane %v166_v54, 4 }
  0x36   :  { %v108_v41 = vrot.slane %v107_v39, 2  ;;  %v161_v61 = vadd.f32 %v160_v55, %v159_v52  ;;  %v340_v55 = vmov 1966171168  }
  0x37   :  { %v115_v42 = vrot.slane %v114_v40, 2  ;;  %v168_v62 = vadd.f32 %v167_v56, %v166_v54  ;;  %v228_v56 = vunpack.c.l.s4 %v340_v55 }
  0x38   :  { %v109_v43 = vadd.f32 %v108_v41, %v107_v39  ;;  %v162_v5 = vrot.slane %v161_v61, 2  ;;  %v146_v41 = vrot.slane %v145_v31, 1 }
  0x39   :  { %v116_v44 = vadd.f32 %v115_v42, %v114_v40  ;;  %v169_v6 = vrot.slane %v168_v62, 2  ;;  %v153_v42 = vrot.slane %v152_v32, 1  ;;  %v229_v1 = vunpack.c.0.s8 %v228_v56 }
  0x3a   :  { %v110_v45 = vrot.slane %v109_v43, 1  ;;  %v163_v14 = vadd.f32 %v162_v5, %v161_v61  ;;  %v147_v50 = vadd.f32 %v146_v41, %v145_v31 }
  0x3b   :  { %v117_v46 = vrot.slane %v116_v44, 1  ;;  %v170_v15 = vadd.f32 %v169_v6, %v168_v62 }
  0x3c   :  { %v111_v47 = vadd.f32 %v110_v45, %v109_v43  ;;  %v164_v20 = vrot.slane %v163_v14, 1 }
  0x3d   :  { %v118_v48 = vadd.f32 %v117_v46, %v116_v44  ;;  %v171_v21 = vrot.slane %v170_v15, 1 }
  0x3e   :  { %281 = vrcp.f32 %v111_v47  ;;  %v165_v27 = vadd.f32 %v164_v20, %v163_v14 }
  0x3f   :  { %283 = vrcp.f32 %v118_v48  ;;  %v172_v28 = vadd.f32 %v171_v21, %v170_v15  ;;  %v232_v15 = vsub.s32 %v229_v1, %v378_v3 }
  0x40   :  { %285 = vlog2.f32 %v111_v47 }
  0x41   :  { %287 = vlog2.f32 %v118_v48 }
  0x48   :  { %v282_v51 = vpop.eup %281 }
  0x49   :  { %v284_v53 = vpop.eup %283  ;;  %v175_v57 = vmul.f32 %v282_v51, %v111_v47 }
  0x4a   :  { %v176_v58 = vmul.f32 %v284_v53, %v118_v48  ;;  %v286_v43 = vpop.eup %285 }
  0x4b   :  { %v177_v63 = vsub.f32 2.0, %v175_v57  ;;  %v288_v46 = vpop.eup %287 }
  0x4c   :  { %v178_v0 = vsub.f32 2.0, %v176_v58  ;;  %v122_v52 = vmul.f32 0.6931472, %v288_v46 }
  0x4d   :  { %v179_v7 = vmul.f32 %v282_v51, %v177_v63  ;;  %v120_v51 = vmul.f32 0.6931472, %v286_v43 }
  0x4e   :  { %v180_v9 = vmul.f32 %v284_v53, %v178_v0 }
  0x4f   :  { %v181_v16 = vmul.f32 %v179_v7, %v111_v47  ;;  %v155_v61 = vsub.f32 %v147_v50, %v120_v51 }
  0x50   :  { %v182_v17 = vmul.f32 %v180_v9, %v118_v48 }
  0x51   :  { %v183_v22 = vsub.f32 2.0, %v181_v16 }
  0x52   :  { %v184_v23 = vsub.f32 2.0, %v182_v17 }
  0x53   :  { %v185_v29 = vmul.f32 %v183_v22, %v179_v7 }
  0x54   :  { %v186_v30 = vmul.f32 %v184_v23, %v180_v9 }
  0x55   :  { %v187_v37 = vmul.f32 %v185_v29, %v165_v27 }
  0x56   :  { %v188_v38 = vmul.f32 %v186_v30, %v172_v28 }
  0x57   :  { %v215_v49 = vsub.f32 1.0, %v187_v37 }
  0x59   :  { %v217_v59 = vmax.f32 %v215_v49, 0.0 }
  0x5b   :  { %v219_v6 = vmul.f32 %v217_v59, %v217_v59 }
  0x93   :  { %v193_v26 = vpop.permute.xlu0 %192 }
  0x94   :  { %v195_v33 = vmul.f32 %v396_v11, %v193_v26  ;;  %v196_v34 = vmul.f32 %v398_v12, %v193_v26  ;;  %v216_v11 = vsub.f32 1.0, %v188_v38  ;;  %v154_v12 = vadd.f32 %v153_v42, %v152_v32 }
  0x96   :  { %v197_v35 = vsel %vm84_vm3, %v195_v33, 0.0  ;;  %v204_v36 = vsel %vm84_vm3, %v196_v34, 0.0  ;;  %v218_v60 = vmax.f32 %v216_v11, 0.0  ;;  %v156_v62 = vsub.f32 %v154_v12, %v122_v52 }
  0x97   :  { %v198_v39 = vrot.slane %v197_v35, 4  ;;  %v205_v40 = vrot.slane %v204_v36, 4 }
  0x98   :  { %v220_v7 = vmul.f32 %v218_v60, %v218_v60 }
  0x99   :  { %v199_v44 = vadd.f32 %v198_v39, %v197_v35  ;;  %v206_v45 = vadd.f32 %v205_v40, %v204_v36 }
  0x9b   :  { %v200_v47 = vrot.slane %v199_v44, 2  ;;  %v207_v48 = vrot.slane %v206_v45, 2 }
  0x9d   :  { %v201_v53 = vadd.f32 %v200_v47, %v199_v44  ;;  %v208_v54 = vadd.f32 %v207_v48, %v206_v45 }
  0x9f   :  { %v202_v57 = vrot.slane %v201_v53, 1  ;;  %v209_v58 = vrot.slane %v208_v54, 1 }
  0xa1   :  { %v203_v63 = vadd.f32 %v202_v57, %v201_v53  ;;  %v210_v0 = vadd.f32 %v209_v58, %v208_v54 }
  0xa3   :  { %v211_v4 = vsub.f32 0.0, %v203_v63  ;;  %v212_v5 = vsub.f32 0.0, %v210_v0 }
  0xa5   :  { %v213_v9 = vmul.f32 %v211_v4, %v155_v61  ;;  %v214_v10 = vmul.f32 %v212_v5, %v156_v62 }
  0xa7   :  { %v221_v13 = vmul.f32 %v219_v6, %v213_v9  ;;  %v222_v14 = vmul.f32 %v220_v7, %v214_v10 }
  0xa9   :  { %v226_v16 = vcombine.low %v221_v13, %v222_v14 }
  0xab   :  { %v233_v17 = vrot.slane %v226_v16, %v232_v15 }
  0xad   :  { %v240_v19 = vrot.slane %v233_v17, %v232_v15 }
  0xaf   :  { %v242_v20 = vsel %vm83_vm4, %v240_v19, 0.0 }
  0xb0   :  { %v243_v21 = vadd.f32 %v242_v20, %v223_v18 }
  0xb2   :  { %248 = vst.msk [vmem:[#allocation5] sm:$0x3] %vm374_vm0, %v243_v21 }
  0xb3   :  { %322 = shalt.err (!%p319_p12)
}
  0xb4   :  { %s323_s30 = scalar_lea.hbm %s435_s3, 32 }
  0xb5   :  { %p324_p13 = scmp.ne.s32.totalorder %s435_s3, %s323_s30  ;;  %p327_p0 = scmp.lt.u32.totalorder %s323_s30, %s435_s3 }
  0xb7   :  { %p329_p1 = pnand %p327_p0, %p324_p13 }
  0xb9   :  { %332 = shalt.err (!%p329_p1)
}
  0xba   :  { %258 = dma.vmem_to_hbm [thread:$0]  %s256_s2, 32, %s435_s3, [#allocation4]  }
  0xbb   :  { %335 = dma.done.wait [#allocation4], 32  }
  0xbc   :  { %336 = vsyncadd [#allocation4], 4294967264 }
  0xbd   :  { %262 = vsyncpa [#allocation3], 1 }
  0xbe   :  { %263 = vsyncpa [#allocation4], 1 }

</bundles_post_ra>
